<compile_context>
chip_gen: v5e
topology: v5e:2x2
jax: 0.10.0
libtpu: 0.0.40
codegen_flags: <defaults>
</compile_context>

<pallas_src>
import numpy as np
import jax
import jax.numpy as jnp
from jax.experimental import pallas as pl
from jax.experimental.pallas import tpu as pltpu


OUT_DIM = 5      # Linear(H, 5)
OUT_PAD = 128    # lane-dense padded output width


# ----------------------------- Pallas kernel -----------------------------
def lstm_kernel(x_ref, mask_ref, wih_ref, whh_ref, b_ref, wout_ref, bout_ref,
                out_ref):
    """Single-shot LSTM forward.

    x_ref    : (T*B, E)  time-major embedded inputs (rows t*B:(t+1)*B = step t)
    mask_ref : (T*B, 1)  f32 {0,1} validity mask (t < length[b])
    wih_ref  : (E, 4H)   W_ih^T
    whh_ref  : (H, 4H)   W_hh^T
    b_ref    : (1, 4H)   b_ih + b_hh
    wout_ref : (H, 128)  W_out^T zero-padded to 128 lanes
    bout_ref : (1, 128)  b_out zero-padded
    out_ref  : (B, 128)
    """
    TB = x_ref.shape[0]
    H = whh_ref.shape[0]
    B = out_ref.shape[0]
    T = TB // B

    # Phase 1: time-parallel input projection, one MXU pass for all timesteps.
    gates_x = (jnp.dot(x_ref[...], wih_ref[...],
                       preferred_element_type=jnp.float32) + b_ref[...])

    # Hoist loop-invariant loads out of the unrolled recurrence.
    whh = whh_ref[...]
    mask_all = mask_ref[...]

    h = jnp.zeros((B, H), jnp.float32)
    c = jnp.zeros((B, H), jnp.float32)

    # Phase 2: serial recurrence. T is tiny and static -> fully unrolled
    # straight-line code; only one (B,H)@(H,4H) matmul remains per step.
    for t in range(T):
        g = gates_x[t * B:(t + 1) * B, :] + jnp.dot(
            h, whh, preferred_element_type=jnp.float32)
        # PyTorch LSTM gate order: input, forget, cell(g), output.
        i_g = jax.nn.sigmoid(g[:, 0:H])
        f_g = jax.nn.sigmoid(g[:, H:2 * H])
        g_g = jnp.tanh(g[:, 2 * H:3 * H])
        o_g = jax.nn.sigmoid(g[:, 3 * H:4 * H])
        c_new = f_g * c + i_g * g_g
        h_new = o_g * jnp.tanh(c_new)
        # pack_padded_sequence: state only advances while t < length[b].
        m = mask_all[t * B:(t + 1) * B, :]            # (B, 1) in {0., 1.}
        h = m * h_new + (1.0 - m) * h
        c = m * c_new + (1.0 - m) * c

    # Fused final Linear(H, 5); lane-dense (128-wide) output store.
    out_ref[...] = (jnp.dot(h, wout_ref[...],
                            preferred_element_type=jnp.float32)
                    + bout_ref[...])


# ------------------------------- wrapper ----------------------------------
def custom_lstm_forward(tokens, lengths, params):
    """tokens: (B, T) int32, lengths: (B,) int32."""
    B, T = tokens.shape
    E = params["embedding"].shape[1]
    H = params["w_hh"].shape[1]

    # Pad batch to a multiple of 8 sublanes (padded rows get token 0 /
    # length 0, so their state stays zero and they are sliced off).
    B_pad = max(8, -(-B // 8) * 8)
    tokens_p = jnp.zeros((B_pad, T), jnp.int32).at[:B, :].set(tokens)
    lengths_p = jnp.zeros((B_pad,), jnp.int32).at[:B].set(
        lengths.astype(jnp.int32))

    # Embedding lookup directly in time-major order (no transpose of the
    # embedded tensor afterwards).
    # TODO(synk): Dropout(0.2) is identity at inference; training-mode
    # stochastic masking is not reproduced here.
    emb_tm = params["embedding"][tokens_p.T].astype(jnp.float32)   # (T,B_pad,E)
    x2d = emb_tm.reshape(T * B_pad, E)

    # Validity mask precomputed once: row t*B_pad + b is 1.0 iff t < length[b].
    mask2d = (jnp.arange(T)[:, None] < lengths_p[None, :]).astype(
        jnp.float32).reshape(T * B_pad, 1)

    # Weights pre-transposed; biases combined.
    wih_t = jnp.transpose(params["w_ih"]).astype(jnp.float32)      # (E, 4H)
    whh_t = jnp.transpose(params["w_hh"]).astype(jnp.float32)      # (H, 4H)
    b2d = (params["b_ih"] + params["b_hh"]).reshape(1, 4 * H).astype(jnp.float32)

    # Lane-dense padded output head.
    wout_t = jnp.zeros((H, OUT_PAD), jnp.float32).at[:, :OUT_DIM].set(
        jnp.transpose(params["w_out"]).astype(jnp.float32))
    bout2d = jnp.zeros((1, OUT_PAD), jnp.float32).at[:, :OUT_DIM].set(
        params["b_out"].astype(jnp.float32))

    vmem = pl.BlockSpec(memory_space=pltpu.MemorySpace.VMEM)
    out_p = pl.pallas_call(
        lstm_kernel,
        out_shape=jax.ShapeDtypeStruct((B_pad, OUT_PAD), jnp.float32),
        in_specs=[vmem, vmem, vmem, vmem, vmem, vmem, vmem],
        out_specs=vmem,
    )(x2d, mask2d, wih_t, whh_t, b2d, wout_t, bout2d)

    return out_p[:B, :OUT_DIM]


# -------------------------- pure-JAX reference -----------------------------
def reference_forward(tokens, lengths, params):
    B, T = tokens.shape
    H = params["w_hh"].shape[1]
    emb = params["embedding"][tokens].astype(jnp.float32)          # (B, T, E)
    x_tm = jnp.transpose(emb, (1, 0, 2))                           # (T, B, E)

    def step(carry, inp):
        h, c = carry
        x_t, t = inp
        gates = (x_t @ params["w_ih"].T + h @ params["w_hh"].T
                 + params["b_ih"] + params["b_hh"])
        i_g = jax.nn.sigmoid(gates[:, 0:H])
        f_g = jax.nn.sigmoid(gates[:, H:2 * H])
        g_g = jnp.tanh(gates[:, 2 * H:3 * H])
        o_g = jax.nn.sigmoid(gates[:, 3 * H:4 * H])
        c_new = f_g * c + i_g * g_g
        h_new = o_g * jnp.tanh(c_new)
        mask = (t < lengths)[:, None]
        h = jnp.where(mask, h_new, h)
        c = jnp.where(mask, c_new, c)
        return (h, c), None

    h0 = jnp.zeros((B, H), jnp.float32)
    c0 = jnp.zeros((B, H), jnp.float32)
    (h_f, _), _ = jax.lax.scan(step, (h0, c0), (x_tm, jnp.arange(T)))
    return h_f @ params["w_out"].T + params["b_out"]


# --------------------------------- main ------------------------------------
if __name__ == "__main__":
    VOCAB, E, H = 20, 16, 32
    B, T = 2, 8

    key = jax.random.PRNGKey(0)
    ks = jax.random.split(key, 8)

    embedding = jax.random.normal(ks[0], (VOCAB, E), jnp.float32) * 0.5
    embedding = embedding.at[0].set(0.0)                           # padding_idx=0
    params = {
        "embedding": embedding,
        "w_ih": jax.random.normal(ks[1], (4 * H, E), jnp.float32) * 0.1,
        "w_hh": jax.random.normal(ks[2], (4 * H, H), jnp.float32) * 0.1,
        "b_ih": jax.random.normal(ks[3], (4 * H,), jnp.float32) * 0.1,
        "b_hh": jax.random.normal(ks[4], (4 * H,), jnp.float32) * 0.1,
        "w_out": jax.random.normal(ks[5], (5, H), jnp.float32) * 0.1,
        "b_out": jax.random.normal(ks[6], (5,), jnp.float32) * 0.1,
    }

    tokens = jax.random.randint(ks[7], (B, T), 1, VOCAB).astype(jnp.int32)
    lengths = jnp.array([T, 5], jnp.int32)
    # zero out padded positions (as a padded batch would be)
    pad_mask = jnp.arange(T)[None, :] < lengths[:, None]
    tokens = jnp.where(pad_mask, tokens, 0)

    out = custom_lstm_forward(tokens, lengths, params)
    out = jax.block_until_ready(out)

    ref = jax.block_until_ready(reference_forward(tokens, lengths, params))
    assert out.shape == (B, 5)
    assert np.allclose(np.asarray(out), np.asarray(ref), atol=1e-5, rtol=1e-5), (
        np.max(np.abs(np.asarray(out) - np.asarray(ref))))

    print("KERNEL_OK")
</pallas_src>

<mosaic_0001>
module attributes {stable_mosaic.version = 11 : i64} {
  func.func @lstm_kernel(%arg0: memref<64x16xf32, #tpu.memory_space<vmem>>, %arg1: memref<64x1xf32, #tpu.memory_space<vmem>>, %arg2: memref<16x128xf32, #tpu.memory_space<vmem>>, %arg3: memref<32x128xf32, #tpu.memory_space<vmem>>, %arg4: memref<1x128xf32, #tpu.memory_space<vmem>>, %arg5: memref<32x128xf32, #tpu.memory_space<vmem>>, %arg6: memref<1x128xf32, #tpu.memory_space<vmem>>, %arg7: memref<8x128xf32, #tpu.memory_space<vmem>>) attributes {dimension_semantics = [], scalar_prefetch = 0 : i64, scratch_operands = 0 : i64, tpu.core_type = #tpu.core_type<tc>} {
    %c0 = arith.constant 0 : index
    %c0_0 = arith.constant 0 : index
    %0 = vector.load %arg0[%c0, %c0_0] : memref<64x16xf32, #tpu.memory_space<vmem>>, vector<64x16xf32>
    %c0_1 = arith.constant 0 : index
    %c0_2 = arith.constant 0 : index
    %1 = vector.load %arg2[%c0_1, %c0_2] : memref<16x128xf32, #tpu.memory_space<vmem>>, vector<16x128xf32>
    %cst = arith.constant dense<0.000000e+00> : vector<64x128xf32>
    %2 = tpu.matmul %0, %1, %cst {dimension_numbers = #tpu.dot_dimension_numbers<[1], [0], [0], [1], [0, 0, 1, 1], [], []>} : vector<64x16xf32>, vector<16x128xf32>, vector<64x128xf32> -> vector<64x128xf32>
    %c0_3 = arith.constant 0 : index
    %c0_4 = arith.constant 0 : index
    %3 = vector.load %arg4[%c0_3, %c0_4] : memref<1x128xf32, #tpu.memory_space<vmem>>, vector<1x128xf32>
    %4 = vector.broadcast %3 : vector<1x128xf32> to vector<64x128xf32>
    %5 = arith.addf %2, %4 : vector<64x128xf32>
    %c0_5 = arith.constant 0 : index
    %c0_6 = arith.constant 0 : index
    %6 = vector.load %arg3[%c0_5, %c0_6] : memref<32x128xf32, #tpu.memory_space<vmem>>, vector<32x128xf32>
    %c0_7 = arith.constant 0 : index
    %c0_8 = arith.constant 0 : index
    %7 = vector.load %arg1[%c0_7, %c0_8] : memref<64x1xf32, #tpu.memory_space<vmem>>, vector<64x1xf32>
    %cst_9 = arith.constant 0.000000e+00 : f32
    %8 = vector.broadcast %cst_9 : f32 to vector<8x32xf32>
    %cst_10 = arith.constant 0.000000e+00 : f32
    %9 = vector.broadcast %cst_10 : f32 to vector<8x32xf32>
    %10 = vector.extract_strided_slice %5 {offsets = [0, 0], sizes = [8, 128], strides = [1, 1]} : vector<64x128xf32> to vector<8x128xf32>
    %cst_11 = arith.constant dense<0.000000e+00> : vector<8x128xf32>
    %11 = tpu.matmul %8, %6, %cst_11 {dimension_numbers = #tpu.dot_dimension_numbers<[1], [0], [0], [1], [0, 0, 1, 1], [], []>} : vector<8x32xf32>, vector<32x128xf32>, vector<8x128xf32> -> vector<8x128xf32>
    %12 = arith.addf %10, %11 : vector<8x128xf32>
    %13 = vector.extract_strided_slice %12 {offsets = [0, 0], sizes = [8, 32], strides = [1, 1]} : vector<8x128xf32> to vector<8x32xf32>
    %14 = arith.negf %13 : vector<8x32xf32>
    %15 = math.exp %14 : vector<8x32xf32>
    %cst_12 = arith.constant 1.000000e+00 : f32
    %16 = vector.broadcast %cst_12 : f32 to vector<8x32xf32>
    %17 = arith.addf %16, %15 : vector<8x32xf32>
    %18 = arith.divf %16, %17 : vector<8x32xf32>
    %19 = vector.extract_strided_slice %12 {offsets = [0, 32], sizes = [8, 32], strides = [1, 1]} : vector<8x128xf32> to vector<8x32xf32>
    %20 = arith.negf %19 : vector<8x32xf32>
    %21 = math.exp %20 : vector<8x32xf32>
    %cst_13 = arith.constant 1.000000e+00 : f32
    %22 = vector.broadcast %cst_13 : f32 to vector<8x32xf32>
    %23 = arith.addf %22, %21 : vector<8x32xf32>
    %24 = arith.divf %22, %23 : vector<8x32xf32>
    %25 = vector.extract_strided_slice %12 {offsets = [0, 64], sizes = [8, 32], strides = [1, 1]} : vector<8x128xf32> to vector<8x32xf32>
    %26 = math.tanh %25 : vector<8x32xf32>
    %27 = vector.extract_strided_slice %12 {offsets = [0, 96], sizes = [8, 32], strides = [1, 1]} : vector<8x128xf32> to vector<8x32xf32>
    %28 = arith.negf %27 : vector<8x32xf32>
    %29 = math.exp %28 : vector<8x32xf32>
    %cst_14 = arith.constant 1.000000e+00 : f32
    %30 = vector.broadcast %cst_14 : f32 to vector<8x32xf32>
    %31 = arith.addf %30, %29 : vector<8x32xf32>
    %32 = arith.divf %30, %31 : vector<8x32xf32>
    %33 = arith.mulf %24, %9 : vector<8x32xf32>
    %34 = arith.mulf %18, %26 : vector<8x32xf32>
    %35 = arith.addf %33, %34 : vector<8x32xf32>
    %36 = math.tanh %35 : vector<8x32xf32>
    %37 = arith.mulf %32, %36 : vector<8x32xf32>
    %38 = vector.extract_strided_slice %7 {offsets = [0, 0], sizes = [8, 1], strides = [1, 1]} : vector<64x1xf32> to vector<8x1xf32>
    %39 = vector.broadcast %38 : vector<8x1xf32> to vector<8x32xf32>
    %40 = arith.mulf %39, %37 : vector<8x32xf32>
    %cst_15 = arith.constant 1.000000e+00 : f32
    %41 = vector.broadcast %cst_15 : f32 to vector<8x1xf32>
    %42 = arith.subf %41, %38 : vector<8x1xf32>
    %43 = vector.broadcast %42 : vector<8x1xf32> to vector<8x32xf32>
    %44 = arith.mulf %43, %8 : vector<8x32xf32>
    %45 = arith.addf %40, %44 : vector<8x32xf32>
    %46 = vector.broadcast %38 : vector<8x1xf32> to vector<8x32xf32>
    %47 = arith.mulf %46, %35 : vector<8x32xf32>
    %cst_16 = arith.constant 1.000000e+00 : f32
    %48 = vector.broadcast %cst_16 : f32 to vector<8x1xf32>
    %49 = arith.subf %48, %38 : vector<8x1xf32>
    %50 = vector.broadcast %49 : vector<8x1xf32> to vector<8x32xf32>
    %51 = arith.mulf %50, %9 : vector<8x32xf32>
    %52 = arith.addf %47, %51 : vector<8x32xf32>
    %53 = vector.extract_strided_slice %5 {offsets = [8, 0], sizes = [8, 128], strides = [1, 1]} : vector<64x128xf32> to vector<8x128xf32>
    %cst_17 = arith.constant dense<0.000000e+00> : vector<8x128xf32>
    %54 = tpu.matmul %45, %6, %cst_17 {dimension_numbers = #tpu.dot_dimension_numbers<[1], [0], [0], [1], [0, 0, 1, 1], [], []>} : vector<8x32xf32>, vector<32x128xf32>, vector<8x128xf32> -> vector<8x128xf32>
    %55 = arith.addf %53, %54 : vector<8x128xf32>
    %56 = vector.extract_strided_slice %55 {offsets = [0, 0], sizes = [8, 32], strides = [1, 1]} : vector<8x128xf32> to vector<8x32xf32>
    %57 = arith.negf %56 : vector<8x32xf32>
    %58 = math.exp %57 : vector<8x32xf32>
    %cst_18 = arith.constant 1.000000e+00 : f32
    %59 = vector.broadcast %cst_18 : f32 to vector<8x32xf32>
    %60 = arith.addf %59, %58 : vector<8x32xf32>
    %61 = arith.divf %59, %60 : vector<8x32xf32>
    %62 = vector.extract_strided_slice %55 {offsets = [0, 32], sizes = [8, 32], strides = [1, 1]} : vector<8x128xf32> to vector<8x32xf32>
    %63 = arith.negf %62 : vector<8x32xf32>
    %64 = math.exp %63 : vector<8x32xf32>
    %cst_19 = arith.constant 1.000000e+00 : f32
    %65 = vector.broadcast %cst_19 : f32 to vector<8x32xf32>
    %66 = arith.addf %65, %64 : vector<8x32xf32>
    %67 = arith.divf %65, %66 : vector<8x32xf32>
    %68 = vector.extract_strided_slice %55 {offsets = [0, 64], sizes = [8, 32], strides = [1, 1]} : vector<8x128xf32> to vector<8x32xf32>
    %69 = math.tanh %68 : vector<8x32xf32>
    %70 = vector.extract_strided_slice %55 {offsets = [0, 96], sizes = [8, 32], strides = [1, 1]} : vector<8x128xf32> to vector<8x32xf32>
    %71 = arith.negf %70 : vector<8x32xf32>
    %72 = math.exp %71 : vector<8x32xf32>
    %cst_20 = arith.constant 1.000000e+00 : f32
    %73 = vector.broadcast %cst_20 : f32 to vector<8x32xf32>
    %74 = arith.addf %73, %72 : vector<8x32xf32>
    %75 = arith.divf %73, %74 : vector<8x32xf32>
    %76 = arith.mulf %67, %52 : vector<8x32xf32>
    %77 = arith.mulf %61, %69 : vector<8x32xf32>
    %78 = arith.addf %76, %77 : vector<8x32xf32>
    %79 = math.tanh %78 : vector<8x32xf32>
    %80 = arith.mulf %75, %79 : vector<8x32xf32>
    %81 = vector.extract_strided_slice %7 {offsets = [8, 0], sizes = [8, 1], strides = [1, 1]} : vector<64x1xf32> to vector<8x1xf32>
    %82 = vector.broadcast %81 : vector<8x1xf32> to vector<8x32xf32>
    %83 = arith.mulf %82, %80 : vector<8x32xf32>
    %cst_21 = arith.constant 1.000000e+00 : f32
    %84 = vector.broadcast %cst_21 : f32 to vector<8x1xf32>
    %85 = arith.subf %84, %81 : vector<8x1xf32>
    %86 = vector.broadcast %85 : vector<8x1xf32> to vector<8x32xf32>
    %87 = arith.mulf %86, %45 : vector<8x32xf32>
    %88 = arith.addf %83, %87 : vector<8x32xf32>
    %89 = vector.broadcast %81 : vector<8x1xf32> to vector<8x32xf32>
    %90 = arith.mulf %89, %78 : vector<8x32xf32>
    %cst_22 = arith.constant 1.000000e+00 : f32
    %91 = vector.broadcast %cst_22 : f32 to vector<8x1xf32>
    %92 = arith.subf %91, %81 : vector<8x1xf32>
    %93 = vector.broadcast %92 : vector<8x1xf32> to vector<8x32xf32>
    %94 = arith.mulf %93, %52 : vector<8x32xf32>
    %95 = arith.addf %90, %94 : vector<8x32xf32>
    %96 = vector.extract_strided_slice %5 {offsets = [16, 0], sizes = [8, 128], strides = [1, 1]} : vector<64x128xf32> to vector<8x128xf32>
    %cst_23 = arith.constant dense<0.000000e+00> : vector<8x128xf32>
    %97 = tpu.matmul %88, %6, %cst_23 {dimension_numbers = #tpu.dot_dimension_numbers<[1], [0], [0], [1], [0, 0, 1, 1], [], []>} : vector<8x32xf32>, vector<32x128xf32>, vector<8x128xf32> -> vector<8x128xf32>
    %98 = arith.addf %96, %97 : vector<8x128xf32>
    %99 = vector.extract_strided_slice %98 {offsets = [0, 0], sizes = [8, 32], strides = [1, 1]} : vector<8x128xf32> to vector<8x32xf32>
    %100 = arith.negf %99 : vector<8x32xf32>
    %101 = math.exp %100 : vector<8x32xf32>
    %cst_24 = arith.constant 1.000000e+00 : f32
    %102 = vector.broadcast %cst_24 : f32 to vector<8x32xf32>
    %103 = arith.addf %102, %101 : vector<8x32xf32>
    %104 = arith.divf %102, %103 : vector<8x32xf32>
    %105 = vector.extract_strided_slice %98 {offsets = [0, 32], sizes = [8, 32], strides = [1, 1]} : vector<8x128xf32> to vector<8x32xf32>
    %106 = arith.negf %105 : vector<8x32xf32>
    %107 = math.exp %106 : vector<8x32xf32>
    %cst_25 = arith.constant 1.000000e+00 : f32
    %108 = vector.broadcast %cst_25 : f32 to vector<8x32xf32>
    %109 = arith.addf %108, %107 : vector<8x32xf32>
    %110 = arith.divf %108, %109 : vector<8x32xf32>
    %111 = vector.extract_strided_slice %98 {offsets = [0, 64], sizes = [8, 32], strides = [1, 1]} : vector<8x128xf32> to vector<8x32xf32>
    %112 = math.tanh %111 : vector<8x32xf32>
    %113 = vector.extract_strided_slice %98 {offsets = [0, 96], sizes = [8, 32], strides = [1, 1]} : vector<8x128xf32> to vector<8x32xf32>
    %114 = arith.negf %113 : vector<8x32xf32>
    %115 = math.exp %114 : vector<8x32xf32>
    %cst_26 = arith.constant 1.000000e+00 : f32
    %116 = vector.broadcast %cst_26 : f32 to vector<8x32xf32>
    %117 = arith.addf %116, %115 : vector<8x32xf32>
    %118 = arith.divf %116, %117 : vector<8x32xf32>
    %119 = arith.mulf %110, %95 : vector<8x32xf32>
    %120 = arith.mulf %104, %112 : vector<8x32xf32>
    %121 = arith.addf %119, %120 : vector<8x32xf32>
    %122 = math.tanh %121 : vector<8x32xf32>
    %123 = arith.mulf %118, %122 : vector<8x32xf32>
    %124 = vector.extract_strided_slice %7 {offsets = [16, 0], sizes = [8, 1], strides = [1, 1]} : vector<64x1xf32> to vector<8x1xf32>
    %125 = vector.broadcast %124 : vector<8x1xf32> to vector<8x32xf32>
    %126 = arith.mulf %125, %123 : vector<8x32xf32>
    %cst_27 = arith.constant 1.000000e+00 : f32
    %127 = vector.broadcast %cst_27 : f32 to vector<8x1xf32>
    %128 = arith.subf %127, %124 : vector<8x1xf32>
    %129 = vector.broadcast %128 : vector<8x1xf32> to vector<8x32xf32>
    %130 = arith.mulf %129, %88 : vector<8x32xf32>
    %131 = arith.addf %126, %130 : vector<8x32xf32>
    %132 = vector.broadcast %124 : vector<8x1xf32> to vector<8x32xf32>
    %133 = arith.mulf %132, %121 : vector<8x32xf32>
    %cst_28 = arith.constant 1.000000e+00 : f32
    %134 = vector.broadcast %cst_28 : f32 to vector<8x1xf32>
    %135 = arith.subf %134, %124 : vector<8x1xf32>
    %136 = vector.broadcast %135 : vector<8x1xf32> to vector<8x32xf32>
    %137 = arith.mulf %136, %95 : vector<8x32xf32>
    %138 = arith.addf %133, %137 : vector<8x32xf32>
    %139 = vector.extract_strided_slice %5 {offsets = [24, 0], sizes = [8, 128], strides = [1, 1]} : vector<64x128xf32> to vector<8x128xf32>
    %cst_29 = arith.constant dense<0.000000e+00> : vector<8x128xf32>
    %140 = tpu.matmul %131, %6, %cst_29 {dimension_numbers = #tpu.dot_dimension_numbers<[1], [0], [0], [1], [0, 0, 1, 1], [], []>} : vector<8x32xf32>, vector<32x128xf32>, vector<8x128xf32> -> vector<8x128xf32>
    %141 = arith.addf %139, %140 : vector<8x128xf32>
    %142 = vector.extract_strided_slice %141 {offsets = [0, 0], sizes = [8, 32], strides = [1, 1]} : vector<8x128xf32> to vector<8x32xf32>
    %143 = arith.negf %142 : vector<8x32xf32>
    %144 = math.exp %143 : vector<8x32xf32>
    %cst_30 = arith.constant 1.000000e+00 : f32
    %145 = vector.broadcast %cst_30 : f32 to vector<8x32xf32>
    %146 = arith.addf %145, %144 : vector<8x32xf32>
    %147 = arith.divf %145, %146 : vector<8x32xf32>
    %148 = vector.extract_strided_slice %141 {offsets = [0, 32], sizes = [8, 32], strides = [1, 1]} : vector<8x128xf32> to vector<8x32xf32>
    %149 = arith.negf %148 : vector<8x32xf32>
    %150 = math.exp %149 : vector<8x32xf32>
    %cst_31 = arith.constant 1.000000e+00 : f32
    %151 = vector.broadcast %cst_31 : f32 to vector<8x32xf32>
    %152 = arith.addf %151, %150 : vector<8x32xf32>
    %153 = arith.divf %151, %152 : vector<8x32xf32>
    %154 = vector.extract_strided_slice %141 {offsets = [0, 64], sizes = [8, 32], strides = [1, 1]} : vector<8x128xf32> to vector<8x32xf32>
    %155 = math.tanh %154 : vector<8x32xf32>
    %156 = vector.extract_strided_slice %141 {offsets = [0, 96], sizes = [8, 32], strides = [1, 1]} : vector<8x128xf32> to vector<8x32xf32>
    %157 = arith.negf %156 : vector<8x32xf32>
    %158 = math.exp %157 : vector<8x32xf32>
    %cst_32 = arith.constant 1.000000e+00 : f32
    %159 = vector.broadcast %cst_32 : f32 to vector<8x32xf32>
    %160 = arith.addf %159, %158 : vector<8x32xf32>
    %161 = arith.divf %159, %160 : vector<8x32xf32>
    %162 = arith.mulf %153, %138 : vector<8x32xf32>
    %163 = arith.mulf %147, %155 : vector<8x32xf32>
    %164 = arith.addf %162, %163 : vector<8x32xf32>
    %165 = math.tanh %164 : vector<8x32xf32>
    %166 = arith.mulf %161, %165 : vector<8x32xf32>
    %167 = vector.extract_strided_slice %7 {offsets = [24, 0], sizes = [8, 1], strides = [1, 1]} : vector<64x1xf32> to vector<8x1xf32>
    %168 = vector.broadcast %167 : vector<8x1xf32> to vector<8x32xf32>
    %169 = arith.mulf %168, %166 : vector<8x32xf32>
    %cst_33 = arith.constant 1.000000e+00 : f32
    %170 = vector.broadcast %cst_33 : f32 to vector<8x1xf32>
    %171 = arith.subf %170, %167 : vector<8x1xf32>
    %172 = vector.broadcast %171 : vector<8x1xf32> to vector<8x32xf32>
    %173 = arith.mulf %172, %131 : vector<8x32xf32>
    %174 = arith.addf %169, %173 : vector<8x32xf32>
    %175 = vector.broadcast %167 : vector<8x1xf32> to vector<8x32xf32>
    %176 = arith.mulf %175, %164 : vector<8x32xf32>
    %cst_34 = arith.constant 1.000000e+00 : f32
    %177 = vector.broadcast %cst_34 : f32 to vector<8x1xf32>
    %178 = arith.subf %177, %167 : vector<8x1xf32>
    %179 = vector.broadcast %178 : vector<8x1xf32> to vector<8x32xf32>
    %180 = arith.mulf %179, %138 : vector<8x32xf32>
    %181 = arith.addf %176, %180 : vector<8x32xf32>
    %182 = vector.extract_strided_slice %5 {offsets = [32, 0], sizes = [8, 128], strides = [1, 1]} : vector<64x128xf32> to vector<8x128xf32>
    %cst_35 = arith.constant dense<0.000000e+00> : vector<8x128xf32>
    %183 = tpu.matmul %174, %6, %cst_35 {dimension_numbers = #tpu.dot_dimension_numbers<[1], [0], [0], [1], [0, 0, 1, 1], [], []>} : vector<8x32xf32>, vector<32x128xf32>, vector<8x128xf32> -> vector<8x128xf32>
    %184 = arith.addf %182, %183 : vector<8x128xf32>
    %185 = vector.extract_strided_slice %184 {offsets = [0, 0], sizes = [8, 32], strides = [1, 1]} : vector<8x128xf32> to vector<8x32xf32>
    %186 = arith.negf %185 : vector<8x32xf32>
    %187 = math.exp %186 : vector<8x32xf32>
    %cst_36 = arith.constant 1.000000e+00 : f32
    %188 = vector.broadcast %cst_36 : f32 to vector<8x32xf32>
    %189 = arith.addf %188, %187 : vector<8x32xf32>
    %190 = arith.divf %188, %189 : vector<8x32xf32>
    %191 = vector.extract_strided_slice %184 {offsets = [0, 32], sizes = [8, 32], strides = [1, 1]} : vector<8x128xf32> to vector<8x32xf32>
    %192 = arith.negf %191 : vector<8x32xf32>
    %193 = math.exp %192 : vector<8x32xf32>
    %cst_37 = arith.constant 1.000000e+00 : f32
    %194 = vector.broadcast %cst_37 : f32 to vector<8x32xf32>
    %195 = arith.addf %194, %193 : vector<8x32xf32>
    %196 = arith.divf %194, %195 : vector<8x32xf32>
    %197 = vector.extract_strided_slice %184 {offsets = [0, 64], sizes = [8, 32], strides = [1, 1]} : vector<8x128xf32> to vector<8x32xf32>
    %198 = math.tanh %197 : vector<8x32xf32>
    %199 = vector.extract_strided_slice %184 {offsets = [0, 96], sizes = [8, 32], strides = [1, 1]} : vector<8x128xf32> to vector<8x32xf32>
    %200 = arith.negf %199 : vector<8x32xf32>
    %201 = math.exp %200 : vector<8x32xf32>
    %cst_38 = arith.constant 1.000000e+00 : f32
    %202 = vector.broadcast %cst_38 : f32 to vector<8x32xf32>
    %203 = arith.addf %202, %201 : vector<8x32xf32>
    %204 = arith.divf %202, %203 : vector<8x32xf32>
    %205 = arith.mulf %196, %181 : vector<8x32xf32>
    %206 = arith.mulf %190, %198 : vector<8x32xf32>
    %207 = arith.addf %205, %206 : vector<8x32xf32>
    %208 = math.tanh %207 : vector<8x32xf32>
    %209 = arith.mulf %204, %208 : vector<8x32xf32>
    %210 = vector.extract_strided_slice %7 {offsets = [32, 0], sizes = [8, 1], strides = [1, 1]} : vector<64x1xf32> to vector<8x1xf32>
    %211 = vector.broadcast %210 : vector<8x1xf32> to vector<8x32xf32>
    %212 = arith.mulf %211, %209 : vector<8x32xf32>
    %cst_39 = arith.constant 1.000000e+00 : f32
    %213 = vector.broadcast %cst_39 : f32 to vector<8x1xf32>
    %214 = arith.subf %213, %210 : vector<8x1xf32>
    %215 = vector.broadcast %214 : vector<8x1xf32> to vector<8x32xf32>
    %216 = arith.mulf %215, %174 : vector<8x32xf32>
    %217 = arith.addf %212, %216 : vector<8x32xf32>
    %218 = vector.broadcast %210 : vector<8x1xf32> to vector<8x32xf32>
    %219 = arith.mulf %218, %207 : vector<8x32xf32>
    %cst_40 = arith.constant 1.000000e+00 : f32
    %220 = vector.broadcast %cst_40 : f32 to vector<8x1xf32>
    %221 = arith.subf %220, %210 : vector<8x1xf32>
    %222 = vector.broadcast %221 : vector<8x1xf32> to vector<8x32xf32>
    %223 = arith.mulf %222, %181 : vector<8x32xf32>
    %224 = arith.addf %219, %223 : vector<8x32xf32>
    %225 = vector.extract_strided_slice %5 {offsets = [40, 0], sizes = [8, 128], strides = [1, 1]} : vector<64x128xf32> to vector<8x128xf32>
    %cst_41 = arith.constant dense<0.000000e+00> : vector<8x128xf32>
    %226 = tpu.matmul %217, %6, %cst_41 {dimension_numbers = #tpu.dot_dimension_numbers<[1], [0], [0], [1], [0, 0, 1, 1], [], []>} : vector<8x32xf32>, vector<32x128xf32>, vector<8x128xf32> -> vector<8x128xf32>
    %227 = arith.addf %225, %226 : vector<8x128xf32>
    %228 = vector.extract_strided_slice %227 {offsets = [0, 0], sizes = [8, 32], strides = [1, 1]} : vector<8x128xf32> to vector<8x32xf32>
    %229 = arith.negf %228 : vector<8x32xf32>
    %230 = math.exp %229 : vector<8x32xf32>
    %cst_42 = arith.constant 1.000000e+00 : f32
    %231 = vector.broadcast %cst_42 : f32 to vector<8x32xf32>
    %232 = arith.addf %231, %230 : vector<8x32xf32>
    %233 = arith.divf %231, %232 : vector<8x32xf32>
    %234 = vector.extract_strided_slice %227 {offsets = [0, 32], sizes = [8, 32], strides = [1, 1]} : vector<8x128xf32> to vector<8x32xf32>
    %235 = arith.negf %234 : vector<8x32xf32>
    %236 = math.exp %235 : vector<8x32xf32>
    %cst_43 = arith.constant 1.000000e+00 : f32
    %237 = vector.broadcast %cst_43 : f32 to vector<8x32xf32>
    %238 = arith.addf %237, %236 : vector<8x32xf32>
    %239 = arith.divf %237, %238 : vector<8x32xf32>
    %240 = vector.extract_strided_slice %227 {offsets = [0, 64], sizes = [8, 32], strides = [1, 1]} : vector<8x128xf32> to vector<8x32xf32>
    %241 = math.tanh %240 : vector<8x32xf32>
    %242 = vector.extract_strided_slice %227 {offsets = [0, 96], sizes = [8, 32], strides = [1, 1]} : vector<8x128xf32> to vector<8x32xf32>
    %243 = arith.negf %242 : vector<8x32xf32>
    %244 = math.exp %243 : vector<8x32xf32>
    %cst_44 = arith.constant 1.000000e+00 : f32
    %245 = vector.broadcast %cst_44 : f32 to vector<8x32xf32>
    %246 = arith.addf %245, %244 : vector<8x32xf32>
    %247 = arith.divf %245, %246 : vector<8x32xf32>
    %248 = arith.mulf %239, %224 : vector<8x32xf32>
    %249 = arith.mulf %233, %241 : vector<8x32xf32>
    %250 = arith.addf %248, %249 : vector<8x32xf32>
    %251 = math.tanh %250 : vector<8x32xf32>
    %252 = arith.mulf %247, %251 : vector<8x32xf32>
    %253 = vector.extract_strided_slice %7 {offsets = [40, 0], sizes = [8, 1], strides = [1, 1]} : vector<64x1xf32> to vector<8x1xf32>
    %254 = vector.broadcast %253 : vector<8x1xf32> to vector<8x32xf32>
    %255 = arith.mulf %254, %252 : vector<8x32xf32>
    %cst_45 = arith.constant 1.000000e+00 : f32
    %256 = vector.broadcast %cst_45 : f32 to vector<8x1xf32>
    %257 = arith.subf %256, %253 : vector<8x1xf32>
    %258 = vector.broadcast %257 : vector<8x1xf32> to vector<8x32xf32>
    %259 = arith.mulf %258, %217 : vector<8x32xf32>
    %260 = arith.addf %255, %259 : vector<8x32xf32>
    %261 = vector.broadcast %253 : vector<8x1xf32> to vector<8x32xf32>
    %262 = arith.mulf %261, %250 : vector<8x32xf32>
    %cst_46 = arith.constant 1.000000e+00 : f32
    %263 = vector.broadcast %cst_46 : f32 to vector<8x1xf32>
    %264 = arith.subf %263, %253 : vector<8x1xf32>
    %265 = vector.broadcast %264 : vector<8x1xf32> to vector<8x32xf32>
    %266 = arith.mulf %265, %224 : vector<8x32xf32>
    %267 = arith.addf %262, %266 : vector<8x32xf32>
    %268 = vector.extract_strided_slice %5 {offsets = [48, 0], sizes = [8, 128], strides = [1, 1]} : vector<64x128xf32> to vector<8x128xf32>
    %cst_47 = arith.constant dense<0.000000e+00> : vector<8x128xf32>
    %269 = tpu.matmul %260, %6, %cst_47 {dimension_numbers = #tpu.dot_dimension_numbers<[1], [0], [0], [1], [0, 0, 1, 1], [], []>} : vector<8x32xf32>, vector<32x128xf32>, vector<8x128xf32> -> vector<8x128xf32>
    %270 = arith.addf %268, %269 : vector<8x128xf32>
    %271 = vector.extract_strided_slice %270 {offsets = [0, 0], sizes = [8, 32], strides = [1, 1]} : vector<8x128xf32> to vector<8x32xf32>
    %272 = arith.negf %271 : vector<8x32xf32>
    %273 = math.exp %272 : vector<8x32xf32>
    %cst_48 = arith.constant 1.000000e+00 : f32
    %274 = vector.broadcast %cst_48 : f32 to vector<8x32xf32>
    %275 = arith.addf %274, %273 : vector<8x32xf32>
    %276 = arith.divf %274, %275 : vector<8x32xf32>
    %277 = vector.extract_strided_slice %270 {offsets = [0, 32], sizes = [8, 32], strides = [1, 1]} : vector<8x128xf32> to vector<8x32xf32>
    %278 = arith.negf %277 : vector<8x32xf32>
    %279 = math.exp %278 : vector<8x32xf32>
    %cst_49 = arith.constant 1.000000e+00 : f32
    %280 = vector.broadcast %cst_49 : f32 to vector<8x32xf32>
    %281 = arith.addf %280, %279 : vector<8x32xf32>
    %282 = arith.divf %280, %281 : vector<8x32xf32>
    %283 = vector.extract_strided_slice %270 {offsets = [0, 64], sizes = [8, 32], strides = [1, 1]} : vector<8x128xf32> to vector<8x32xf32>
    %284 = math.tanh %283 : vector<8x32xf32>
    %285 = vector.extract_strided_slice %270 {offsets = [0, 96], sizes = [8, 32], strides = [1, 1]} : vector<8x128xf32> to vector<8x32xf32>
    %286 = arith.negf %285 : vector<8x32xf32>
    %287 = math.exp %286 : vector<8x32xf32>
    %cst_50 = arith.constant 1.000000e+00 : f32
    %288 = vector.broadcast %cst_50 : f32 to vector<8x32xf32>
    %289 = arith.addf %288, %287 : vector<8x32xf32>
    %290 = arith.divf %288, %289 : vector<8x32xf32>
    %291 = arith.mulf %282, %267 : vector<8x32xf32>
    %292 = arith.mulf %276, %284 : vector<8x32xf32>
    %293 = arith.addf %291, %292 : vector<8x32xf32>
    %294 = math.tanh %293 : vector<8x32xf32>
    %295 = arith.mulf %290, %294 : vector<8x32xf32>
    %296 = vector.extract_strided_slice %7 {offsets = [48, 0], sizes = [8, 1], strides = [1, 1]} : vector<64x1xf32> to vector<8x1xf32>
    %297 = vector.broadcast %296 : vector<8x1xf32> to vector<8x32xf32>
    %298 = arith.mulf %297, %295 : vector<8x32xf32>
    %cst_51 = arith.constant 1.000000e+00 : f32
    %299 = vector.broadcast %cst_51 : f32 to vector<8x1xf32>
    %300 = arith.subf %299, %296 : vector<8x1xf32>
    %301 = vector.broadcast %300 : vector<8x1xf32> to vector<8x32xf32>
    %302 = arith.mulf %301, %260 : vector<8x32xf32>
    %303 = arith.addf %298, %302 : vector<8x32xf32>
    %304 = vector.broadcast %296 : vector<8x1xf32> to vector<8x32xf32>
    %305 = arith.mulf %304, %293 : vector<8x32xf32>
    %cst_52 = arith.constant 1.000000e+00 : f32
    %306 = vector.broadcast %cst_52 : f32 to vector<8x1xf32>
    %307 = arith.subf %306, %296 : vector<8x1xf32>
    %308 = vector.broadcast %307 : vector<8x1xf32> to vector<8x32xf32>
    %309 = arith.mulf %308, %267 : vector<8x32xf32>
    %310 = arith.addf %305, %309 : vector<8x32xf32>
    %311 = vector.extract_strided_slice %5 {offsets = [56, 0], sizes = [8, 128], strides = [1, 1]} : vector<64x128xf32> to vector<8x128xf32>
    %cst_53 = arith.constant dense<0.000000e+00> : vector<8x128xf32>
    %312 = tpu.matmul %303, %6, %cst_53 {dimension_numbers = #tpu.dot_dimension_numbers<[1], [0], [0], [1], [0, 0, 1, 1], [], []>} : vector<8x32xf32>, vector<32x128xf32>, vector<8x128xf32> -> vector<8x128xf32>
    %313 = arith.addf %311, %312 : vector<8x128xf32>
    %314 = vector.extract_strided_slice %313 {offsets = [0, 0], sizes = [8, 32], strides = [1, 1]} : vector<8x128xf32> to vector<8x32xf32>
    %315 = arith.negf %314 : vector<8x32xf32>
    %316 = math.exp %315 : vector<8x32xf32>
    %cst_54 = arith.constant 1.000000e+00 : f32
    %317 = vector.broadcast %cst_54 : f32 to vector<8x32xf32>
    %318 = arith.addf %317, %316 : vector<8x32xf32>
    %319 = arith.divf %317, %318 : vector<8x32xf32>
    %320 = vector.extract_strided_slice %313 {offsets = [0, 32], sizes = [8, 32], strides = [1, 1]} : vector<8x128xf32> to vector<8x32xf32>
    %321 = arith.negf %320 : vector<8x32xf32>
    %322 = math.exp %321 : vector<8x32xf32>
    %cst_55 = arith.constant 1.000000e+00 : f32
    %323 = vector.broadcast %cst_55 : f32 to vector<8x32xf32>
    %324 = arith.addf %323, %322 : vector<8x32xf32>
    %325 = arith.divf %323, %324 : vector<8x32xf32>
    %326 = vector.extract_strided_slice %313 {offsets = [0, 64], sizes = [8, 32], strides = [1, 1]} : vector<8x128xf32> to vector<8x32xf32>
    %327 = math.tanh %326 : vector<8x32xf32>
    %328 = vector.extract_strided_slice %313 {offsets = [0, 96], sizes = [8, 32], strides = [1, 1]} : vector<8x128xf32> to vector<8x32xf32>
    %329 = arith.negf %328 : vector<8x32xf32>
    %330 = math.exp %329 : vector<8x32xf32>
    %cst_56 = arith.constant 1.000000e+00 : f32
    %331 = vector.broadcast %cst_56 : f32 to vector<8x32xf32>
    %332 = arith.addf %331, %330 : vector<8x32xf32>
    %333 = arith.divf %331, %332 : vector<8x32xf32>
    %334 = arith.mulf %325, %310 : vector<8x32xf32>
    %335 = arith.mulf %319, %327 : vector<8x32xf32>
    %336 = arith.addf %334, %335 : vector<8x32xf32>
    %337 = math.tanh %336 : vector<8x32xf32>
    %338 = arith.mulf %333, %337 : vector<8x32xf32>
    %339 = vector.extract_strided_slice %7 {offsets = [56, 0], sizes = [8, 1], strides = [1, 1]} : vector<64x1xf32> to vector<8x1xf32>
    %340 = vector.broadcast %339 : vector<8x1xf32> to vector<8x32xf32>
    %341 = arith.mulf %340, %338 : vector<8x32xf32>
    %cst_57 = arith.constant 1.000000e+00 : f32
    %342 = vector.broadcast %cst_57 : f32 to vector<8x1xf32>
    %343 = arith.subf %342, %339 : vector<8x1xf32>
    %344 = vector.broadcast %343 : vector<8x1xf32> to vector<8x32xf32>
    %345 = arith.mulf %344, %303 : vector<8x32xf32>
    %346 = arith.addf %341, %345 : vector<8x32xf32>
    %c0_58 = arith.constant 0 : index
    %c0_59 = arith.constant 0 : index
    %347 = vector.load %arg5[%c0_58, %c0_59] : memref<32x128xf32, #tpu.memory_space<vmem>>, vector<32x128xf32>
    %cst_60 = arith.constant dense<0.000000e+00> : vector<8x128xf32>
    %348 = tpu.matmul %346, %347, %cst_60 {dimension_numbers = #tpu.dot_dimension_numbers<[1], [0], [0], [1], [0, 0, 1, 1], [], []>} : vector<8x32xf32>, vector<32x128xf32>, vector<8x128xf32> -> vector<8x128xf32>
    %c0_61 = arith.constant 0 : index
    %c0_62 = arith.constant 0 : index
    %349 = vector.load %arg6[%c0_61, %c0_62] : memref<1x128xf32, #tpu.memory_space<vmem>>, vector<1x128xf32>
    %350 = vector.broadcast %349 : vector<1x128xf32> to vector<8x128xf32>
    %351 = arith.addf %348, %350 : vector<8x128xf32>
    %c0_63 = arith.constant 0 : index
    %c0_64 = arith.constant 0 : index
    %352 = vector.load %arg7[%c0_63, %c0_64] : memref<8x128xf32, #tpu.memory_space<vmem>>, vector<8x128xf32>
    tpu.vector_store %arg7[%c0_63, %c0_64], %351 {strides = array<i32>} : memref<8x128xf32, #tpu.memory_space<vmem>>, vector<8x128xf32>,
    return
  }
}

</mosaic_0001>

<bundles_post_ra>
// kernel: tpu_custom_call.1
= control target key start
LH: loop header
LB: loop body
LE: loop exit
PB: predicated region body
PF: predicated region fallthrough
CT: control target
= control target key end

     0   :  { %vm41_vm0 = vcmask 130048   ;;  %s1175_s0 = inlined_call_operand.vmem [shape: f32[64,16], index: 0, kind: input, shape index: {}]   ;;  %s1176_s1 = inlined_call_operand.vmem [shape: f32[64,1], index: 1, kind: input, shape index: {}]   ;;  %s1177_s2 = inlined_call_operand.vmem [shape: f32[16,128], index: 2, kind: input, shape index: {}]   ;;  %s1178_s3 = inlined_call_operand.vmem [shape: f32[32,128], index: 3, kind: input, shape index: {}]   ;;  %s1179_s4 = inlined_call_operand.vmem [shape: f32[1,128], index: 4, kind: input, shape index: {}]   ;;  %s1180_s5 = inlined_call_operand.vmem [shape: f32[32,128], index: 5, kind: input, shape index: {}]   ;;  %s1181_s6 = inlined_call_operand.vmem [shape: f32[1,128], index: 6, kind: input, shape index: {}]   ;;  %s1182_s7 = inlined_call_operand.hbm [shape: f32[8,128], index: 7, kind: output, shape index: {}]  }
   0x1   :  { %v36_v0 = vld [vmem:[%s1177_s2 + $0x8] sm:$0xff]  ;;  %v35_v1 = vld [vmem:[%s1177_s2] sm:$0xff]  ;;  %v989_v3 = vld [vmem:[%s1178_s3 + $0x18] sm:$0xff] }
   0x2   :  { %828 = vmatpush.msra.mxu1 %v36_v0  ;;  %v32_v2 = vld [vmem:[%s1175_s0 + $0x28] sm:$0xff]  ;;  %80 = vmatpush.msra.mxu0 %v36_v0  ;;  %v27_v4 = vld [vmem:[%s1175_s0] sm:$0xff] }
   0x3   :  { %829 = vmatpush.msra.mxu2 %v36_v0  ;;  %294 = vmatpush.msra.mxu3 %v989_v3 }
   0x4   :  { %830 = vmatpush.msra.mxu1 %v35_v1  ;;  %81 = vmatpush.msra.mxu0 %v35_v1 }
   0x5   :  { %12 = vsyncpa [#allocation3], 0  ;;  %809 = vmatmul.msk.f32.vlgmr.msra.gmra.mxu1 %vm41_vm0, %v32_v2  ;;  %v999_v5 = vld [vmem:[%s1178_s3 + $0x10] sm:$0xff]  ;;  %804 = vmatmul.msk.f32.vlgmr.msra.gmra.mxu0 %vm41_vm0, %v27_v4  ;;  %v1006_v6 = vld [vmem:[%s1178_s3 + $0x8] sm:$0xff]  ;;  %v932_v8 = vmov 0.0   ;;  %s933_s17 = smov 64  }
   0x6   :  { %135 = vmatpush.msrb.mxu1 %v989_v3  ;;  %831 = vmatpush.msra.mxu2 %v35_v1  ;;  %v1014_v7 = vld [vmem:[%s1178_s3] sm:$0xff]  ;;  %v935_v31 = vmov 0   ;;  %v33_v38 = vld [vmem:[%s1175_s0 + $0x30] sm:$0xff]  ;;  %v34_v39 = vld [vmem:[%s1175_s0 + $0x38] sm:$0xff]  ;;  %vm119_vm5 = vcmask 261120   ;;  %s936_s29 = smov [#allocation2]  }
   0x7   :  { %295 = vmatpush.msra.mxu3 %v999_v5  ;;  %v1040_v11 = vld [vmem:[%s1179_s4] ss:$0 sm:$0xff]  ;;  %s934_s4 = smov 32   ;;  %837 = vset.pattern.permute.xlu1 %v935_v31  ;;  %v28_v47 = vld [vmem:[%s1175_s0 + $0x8] sm:$0xff]  ;;  %s795_s9 = sshll.u32 %s1182_s7, 4  ;;  %s796_s9 = int_to_ptr.hbm [resolvable:$true] %s795_s9 }
   0x8   :  { %214 = vmatpush.msrb.mxu2 %v989_v3  ;;  %136 = vmatpush.msrb.mxu1 %v999_v5  ;;  %v111_v32 = vld [vmem:[%s1176_s1] sm:$0xff]  ;;  %v112_v59 = vld [vmem:[%s1176_s1 + $0x8] sm:$0xff] }
   0x9   :  { %296 = vmatpush.msra.mxu3 %v1006_v6  ;;  %838 = vset.pattern.permute.xlu2 %v935_v31  ;;  %v187_v33 = vsub.f32 1.0, %v111_v32 }
   0xa   :  { %215 = vmatpush.msrb.mxu2 %v999_v5  ;;  %137 = vmatpush.msrb.mxu1 %v1006_v6 }
   0xb   :  { %297 = vmatpush.msra.mxu3 %v1014_v7  ;;  %839 = vset.pattern.permute.xlu0 %v935_v31  ;;  %v113_v31 = vld [vmem:[%s1176_s1 + $0x10] sm:$0xff] }
   0xc   :  { %216 = vmatpush.msrb.mxu2 %v1006_v6  ;;  %138 = vmatpush.msrb.mxu1 %v1014_v7 }
   0xd   :  { %534 = vmatpush.msrb.mxu3 %v989_v3  ;;  %139 = vmatmul.f32.vlgmr.msrb.gmra.mxu1 %v932_v8  ;;  %v266_v8 = vsub.f32 1.0, %v112_v59 }
   0xe   :  { %217 = vmatpush.msrb.mxu2 %v1014_v7  ;;  %374 = vmatpush.msra.mxu1 %v989_v3 }
   0xf   :  { %535 = vmatpush.msrb.mxu3 %v999_v5  ;;  %190 = vperm.xlu2 %838, %v187_v33  }
  0x10   :  { %375 = vmatpush.msra.mxu1 %v999_v5  ;;  %810 = vmatmul.msk.f32.vlgmr.msra.gmra.mxu2 %vm41_vm0, %v33_v38 }
  0x11   :  { %536 = vmatpush.msrb.mxu3 %v1006_v6  ;;  %454 = vmatpush.msra.mxu2 %v989_v3 }
  0x12   :  { %376 = vmatpush.msra.mxu1 %v1006_v6  ;;  %805 = vmatmul.msk.f32.gmra.mxu0 %vm41_vm0, %v28_v47  ;;  %v346_v47 = vsub.f32 1.0, %v113_v31 }
  0x13   :  { %537 = vmatpush.msrb.mxu3 %v1014_v7  ;;  %455 = vmatpush.msra.mxu2 %v999_v5 }
  0x14   :  { %377 = vmatpush.msra.mxu1 %v1014_v7 }
  0x15   :  { %456 = vmatpush.msra.mxu2 %v1006_v6 }
  0x16   :  { %614 = vmatpush.msrb.mxu1 %v989_v3 }
  0x17   :  { %457 = vmatpush.msra.mxu2 %v1014_v7 }
  0x18   :  { %615 = vmatpush.msrb.mxu1 %v999_v5  ;;  %811 = vmatmul.msk.f32.gmra.mxu2 %vm41_vm0, %v34_v39 }
  0x1a   :  { %616 = vmatpush.msrb.mxu1 %v1006_v6 }
  0x1c   :  { %617 = vmatpush.msrb.mxu1 %v1014_v7 }
  0x69   :  { %v191_v41 = vpop.permute.xlu2 %190 }
  0x6a   :  { %v193_v43 = vmul.f32 0.0, %v191_v41 }
  0x82   :  { %v1035_v9 = vpop.f32.mrf.mxu1  ;;  %v83_v10 = vpop.f32.mrf.mxu0 }
  0x83   :  { %v84_v12 = vadd.f32 %v1040_v11, %v83_v10 }
  0x8a   :  { %v140_v13 = vpop.f32.mrf.mxu1 }
  0x8b   :  { %v143_v14 = vadd.f32 %v140_v13, %v84_v12 }
  0x8d   :  { %842 = vtanh.f32 %v143_v14  ;;  %v812_v16 = vmul.f32 -1.442695, %v143_v14 }
  0x8f   :  { %844 = vpow2.f32 %v812_v16  ;;  %v86_v51 = vpop.f32.mrf.mxu0 }
  0x90   :  { %v87_v52 = vadd.f32 %v1040_v11, %v86_v51 }
  0x93   :  { %v843_v15 = vpop.eup %842  ;;  %v1074_v49 = vpop.f32.mrf.mxu2 }
  0x94   :  { %166 = vrot.lane.b32.xlu0 %v843_v15, %s933_s17 }
  0x95   :  { %v845_v17 = vpop.eup %844 }
  0x96   :  { %v147_v18 = vadd.f32 1.0, %v845_v17 }
  0x98   :  { %846 = vrcp.f32 %v147_v18  ;;  %v159_v24 = vand.u32 2147483648, %v147_v18  ;;  %vm153_vm2 = vweird.f32 %v147_v18  ;;  %v157_v25 = vand.u32 2147483647, %v147_v18 }
  0x9a   :  { %v160_v27 = vor.u32 1.1754944e-38, %v159_v24  ;;  %vm158_vm4 = vcmp.eq.f32.partialorder %v157_v25, 8.507059e+37  ;;  %v29_v24 = vld [vmem:[%s1175_s0 + $0x10] sm:$0xff] }
  0x9b   :  { %v1076_v50 = vpop.f32.mrf.mxu2  ;;  %806 = vmatmul.msk.f32.gmra.mxu0 %vm41_vm0, %v29_v24 }
  0x9e   :  { %v847_v19 = vpop.eup %846 }
  0x9f   :  { %v149_v20 = vmul.f32 %v847_v19, %v147_v18  ;;  %vm154_vm1 = vweird.f32 %v847_v19 }
  0xa0   :  { %vm155_vm3 = vmor %vm153_vm2, %vm154_vm1 }
  0xa1   :  { %v150_v21 = vsub.f32 1.0, %v149_v20 }
  0xa3   :  { %v151_v22 = vmul.f32 %v847_v19, %v150_v21 }
  0xa5   :  { %v152_v23 = vadd.f32 %v847_v19, %v151_v22 }
  0xa7   :  { %v156_v26 = vsel %vm155_vm3, %v847_v19, %v152_v23 }
  0xa8   :  { %v161_v29 = vsel %vm158_vm4, %v160_v27, %v156_v26 }
  0xa9   :  { %v164_v34 = vmul.f32 0.0, %v161_v29 }
 0x106   :  { %v167_v28 = vpop.permute.xlu0 %166 }
 0x107   :  { %v169_v30 = vmul.f32 %v167_v28, %v161_v29 }
 0x109   :  { %171 = vrot.lane.b32.xlu0 %v169_v30, %s934_s4 }
 0x118   :  { %v89_v26 = vpop.f32.mrf.mxu0 }
 0x119   :  { %v90_v27 = vadd.f32 %v1040_v11, %v89_v26 }
 0x17b   :  { %v172_v35 = vpop.permute.xlu0 %171 }
 0x17c   :  { %v1048_v36 = vadd.f32 %v172_v35, %v164_v34 }
 0x17e   :  { %848 = vtanh.f32 %v1048_v36 }
 0x184   :  { %v849_v37 = vpop.eup %848 }
 0x185   :  { %177 = vrot.lane.b32.xlu1 %v849_v37, %s933_s17 }
 0x18d   :  { %183 = vperm.xlu1 %837, %v111_v32  }
 0x1f7   :  { %v178_v40 = vpop.permute.xlu1 %177 }
 0x1f8   :  { %v180_v42 = vmul.f32 %v178_v40, %v161_v29 }
 0x1ff   :  { %v184_v44 = vpop.permute.xlu1 %183 }
 0x200   :  { %v186_v45 = vmul.f32 %v184_v44, %v180_v42  ;;  %v195_v10 = vmul.f32 %v184_v44, %v1048_v36 }
 0x202   :  { %v194_v46 = vadd.f32 %v193_v43, %v186_v45  ;;  %v196_v12 = vadd.f32 %v195_v10, %v193_v43 }
 0x204   :  { %198 = vrot.lane.b32.xlu2 %v194_v46, %s934_s4 }
 0x25e   :  { %v199_v48 = vpop.permute.xlu2 %198 }
 0x25f   :  { %813 = vmatmul.msk.f32.vlgmr.msrb.gmra.mxu2 %vm119_vm5, %v199_v48 }
 0x260   :  { %694 = vmatpush.msrb.mxu2 %v989_v3 }
 0x262   :  { %695 = vmatpush.msrb.mxu2 %v999_v5 }
 0x264   :  { %696 = vmatpush.msrb.mxu2 %v1006_v6 }
 0x266   :  { %697 = vmatpush.msrb.mxu2 %v1014_v7 }
 0x2e2   :  { %v219_v53 = vpop.f32.mrf.mxu2 }
 0x2e3   :  { %v222_v54 = vadd.f32 %v219_v53, %v87_v52 }
 0x2e5   :  { %850 = vtanh.f32 %v222_v54  ;;  %v814_v56 = vmul.f32 -1.442695, %v222_v54 }
 0x2e7   :  { %852 = vpow2.f32 %v814_v56 }
 0x2eb   :  { %v851_v55 = vpop.eup %850 }
 0x2ec   :  { %245 = vrot.lane.b32.xlu0 %v851_v55, %s933_s17 }
 0x2ed   :  { %v853_v57 = vpop.eup %852 }
 0x2ee   :  { %v226_v58 = vadd.f32 1.0, %v853_v57  ;;  %v30_v57 = vld [vmem:[%s1175_s0 + $0x18] sm:$0xff] }
 0x2ef   :  { %807 = vmatmul.msk.f32.gmra.mxu0 %vm41_vm0, %v30_v57 }
 0x2f0   :  { %854 = vrcp.f32 %v226_v58  ;;  %v238_v1 = vand.u32 2147483648, %v226_v58  ;;  %vm232_vm7 = vweird.f32 %v226_v58  ;;  %v236_v2 = vand.u32 2147483647, %v226_v58 }
 0x2f2   :  { %v239_v4 = vor.u32 1.1754944e-38, %v238_v1  ;;  %vm237_vm9 = vcmp.eq.f32.partialorder %v236_v2, 8.507059e+37 }
 0x2f4   :  { %262 = vperm.xlu0 %839, %v112_v59  }
 0x2f6   :  { %v855_v60 = vpop.eup %854 }
 0x2f7   :  { %v228_v61 = vmul.f32 %v855_v60, %v226_v58  ;;  %vm233_vm6 = vweird.f32 %v855_v60 }
 0x2f8   :  { %vm234_vm8 = vmor %vm232_vm7, %vm233_vm6 }
 0x2f9   :  { %v229_v62 = vsub.f32 1.0, %v228_v61 }
 0x2fb   :  { %v230_v63 = vmul.f32 %v855_v60, %v229_v62 }
 0x2fd   :  { %v231_v0 = vadd.f32 %v855_v60, %v230_v63 }
 0x2ff   :  { %v235_v3 = vsel %vm234_vm8, %v855_v60, %v231_v0 }
 0x300   :  { %v240_v6 = vsel %vm237_vm9, %v239_v4, %v235_v3 }
 0x301   :  { %v243_v13 = vmul.f32 %v240_v6, %v196_v12 }
 0x35e   :  { %v246_v5 = vpop.permute.xlu0 %245 }
 0x35f   :  { %v248_v7 = vmul.f32 %v246_v5, %v240_v6 }
 0x361   :  { %250 = vrot.lane.b32.xlu1 %v248_v7, %s934_s4  ;;  %v114_v7 = vld [vmem:[%s1176_s1 + $0x18] sm:$0xff] }
 0x366   :  { %v263_v20 = vpop.permute.xlu0 %262 }
 0x369   :  { %269 = vperm.xlu1 %837, %v266_v8  }
 0x36c   :  { %v92_v2 = vpop.f32.mrf.mxu0 }
 0x36d   :  { %v93_v3 = vadd.f32 %v1040_v11, %v92_v2 }
 0x3d3   :  { %v251_v14 = vpop.permute.xlu1 %250 }
 0x3d4   :  { %v253_v15 = vadd.f32 %v251_v14, %v243_v13 }
 0x3d6   :  { %856 = vtanh.f32 %v253_v15  ;;  %v274_v51 = vmul.f32 %v263_v20, %v253_v15 }
 0x3db   :  { %v270_v17 = vpop.permute.xlu1 %269 }
 0x3dc   :  { %v857_v16 = vpop.eup %856  ;;  %v272_v21 = vmul.f32 %v270_v17, %v194_v46  ;;  %v275_v48 = vmul.f32 %v270_v17, %v196_v12 }
 0x3dd   :  { %256 = vrot.lane.b32.xlu2 %v857_v16, %s933_s17 }
 0x3de   :  { %v276_v52 = vadd.f32 %v275_v48, %v274_v51 }
 0x437   :  { %v257_v18 = vpop.permute.xlu2 %256 }
 0x438   :  { %v259_v19 = vmul.f32 %v257_v18, %v240_v6 }
 0x43a   :  { %v265_v22 = vmul.f32 %v263_v20, %v259_v19 }
 0x43c   :  { %v273_v23 = vadd.f32 %v272_v21, %v265_v22 }
 0x43e   :  { %278 = vrot.lane.b32.xlu2 %v273_v23, %s934_s4 }
 0x498   :  { %v279_v25 = vpop.permute.xlu2 %278 }
 0x499   :  { %815 = vmatmul.msk.f32.vlgmr.msra.gmra.mxu3 %vm119_vm5, %v279_v25  ;;  %v426_v25 = vsub.f32 1.0, %v114_v7 }
 0x51c   :  { %v299_v28 = vpop.f32.mrf.mxu3 }
 0x51d   :  { %v302_v29 = vadd.f32 %v299_v28, %v90_v27 }
 0x51f   :  { %858 = vtanh.f32 %v302_v29  ;;  %v816_v32 = vmul.f32 -1.442695, %v302_v29 }
 0x521   :  { %860 = vpow2.f32 %v816_v32 }
 0x525   :  { %v859_v30 = vpop.eup %858 }
 0x526   :  { %325 = vrot.lane.b32.xlu1 %v859_v30, %s933_s17 }
 0x527   :  { %v861_v33 = vpop.eup %860 }
 0x528   :  { %v306_v34 = vadd.f32 1.0, %v861_v33 }
 0x52a   :  { %862 = vrcp.f32 %v306_v34  ;;  %v318_v40 = vand.u32 2147483648, %v306_v34  ;;  %vm312_vm11 = vweird.f32 %v306_v34  ;;  %v316_v41 = vand.u32 2147483647, %v306_v34 }
 0x52c   :  { %v319_v43 = vor.u32 1.1754944e-38, %v318_v40  ;;  %vm317_vm13 = vcmp.eq.f32.partialorder %v316_v41, 8.507059e+37  ;;  %v31_v40 = vld [vmem:[%s1175_s0 + $0x20] sm:$0xff] }
 0x52d   :  { %808 = vmatmul.msk.f32.gmra.mxu0 %vm41_vm0, %v31_v40 }
 0x52e   :  { %342 = vperm.xlu1 %837, %v113_v31  }
 0x530   :  { %v863_v35 = vpop.eup %862 }
 0x531   :  { %v308_v36 = vmul.f32 %v863_v35, %v306_v34  ;;  %vm313_vm10 = vweird.f32 %v863_v35 }
 0x532   :  { %vm314_vm12 = vmor %vm312_vm11, %vm313_vm10 }
 0x533   :  { %v309_v37 = vsub.f32 1.0, %v308_v36 }
 0x535   :  { %v310_v38 = vmul.f32 %v863_v35, %v309_v37 }
 0x537   :  { %v311_v39 = vadd.f32 %v863_v35, %v310_v38 }
 0x539   :  { %v315_v42 = vsel %vm314_vm12, %v863_v35, %v311_v39 }
 0x53a   :  { %v320_v45 = vsel %vm317_vm13, %v319_v43, %v315_v42 }
 0x53b   :  { %v323_v53 = vmul.f32 %v320_v45, %v276_v52 }
 0x598   :  { %v326_v44 = vpop.permute.xlu1 %325 }
 0x599   :  { %v328_v46 = vmul.f32 %v326_v44, %v320_v45 }
 0x59b   :  { %330 = vrot.lane.b32.xlu2 %v328_v46, %s934_s4 }
 0x5a0   :  { %v343_v61 = vpop.permute.xlu1 %342 }
 0x5a3   :  { %349 = vperm.xlu2 %838, %v346_v47   ;;  %v115_v47 = vld [vmem:[%s1176_s1 + $0x20] sm:$0xff] }
 0x5aa   :  { %v95_v42 = vpop.f32.mrf.mxu0 }
 0x5ab   :  { %v96_v43 = vadd.f32 %v1040_v11, %v95_v42 }
 0x5f5   :  { %v331_v54 = vpop.permute.xlu2 %330 }
 0x5f6   :  { %v333_v55 = vadd.f32 %v331_v54, %v323_v53 }
 0x5f8   :  { %864 = vtanh.f32 %v333_v55  ;;  %v354_v27 = vmul.f32 %v343_v61, %v333_v55 }
 0x5fd   :  { %v350_v58 = vpop.permute.xlu2 %349 }
 0x5fe   :  { %v865_v56 = vpop.eup %864  ;;  %v352_v62 = vmul.f32 %v350_v58, %v273_v23  ;;  %v355_v26 = vmul.f32 %v350_v58, %v276_v52 }
 0x5ff   :  { %336 = vrot.lane.b32.xlu0 %v865_v56, %s933_s17 }
 0x600   :  { %v356_v28 = vadd.f32 %v355_v26, %v354_v27 }
 0x671   :  { %v337_v59 = vpop.permute.xlu0 %336 }
 0x672   :  { %v339_v60 = vmul.f32 %v337_v59, %v320_v45 }
 0x674   :  { %v345_v63 = vmul.f32 %v343_v61, %v339_v60 }
 0x676   :  { %v353_v0 = vadd.f32 %v352_v62, %v345_v63 }
 0x678   :  { %358 = vrot.lane.b32.xlu0 %v353_v0, %s934_s4 }
 0x6ea   :  { %v359_v1 = vpop.permute.xlu0 %358 }
 0x6eb   :  { %817 = vmatmul.msk.f32.vlgmr.msra.gmra.mxu1 %vm119_vm5, %v359_v1  ;;  %v506_v1 = vsub.f32 1.0, %v115_v47 }
 0x768   :  { %v379_v4 = vpop.f32.mrf.mxu1 }
 0x769   :  { %v382_v5 = vadd.f32 %v379_v4, %v93_v3 }
 0x76b   :  { %866 = vtanh.f32 %v382_v5  ;;  %v818_v8 = vmul.f32 -1.442695, %v382_v5 }
 0x76d   :  { %868 = vpow2.f32 %v818_v8 }
 0x771   :  { %v867_v6 = vpop.eup %866 }
 0x772   :  { %405 = vrot.lane.b32.xlu1 %v867_v6, %s933_s17 }
 0x773   :  { %v869_v10 = vpop.eup %868 }
 0x774   :  { %v386_v12 = vadd.f32 1.0, %v869_v10 }
 0x776   :  { %870 = vrcp.f32 %v386_v12  ;;  %v398_v18 = vand.u32 2147483648, %v386_v12  ;;  %vm392_vm15 = vweird.f32 %v386_v12  ;;  %v396_v19 = vand.u32 2147483647, %v386_v12 }
 0x778   :  { %v399_v21 = vor.u32 1.1754944e-38, %v398_v18  ;;  %vm397_vm2 = vcmp.eq.f32.partialorder %v396_v19, 8.507059e+37  ;;  %v99_v19 = vadd.f32 %v1040_v11, %v1035_v9 }
 0x77a   :  { %422 = vperm.xlu1 %837, %v114_v7  }
 0x77c   :  { %v871_v13 = vpop.eup %870 }
 0x77d   :  { %v388_v14 = vmul.f32 %v871_v13, %v386_v12  ;;  %vm393_vm14 = vweird.f32 %v871_v13 }
 0x77e   :  { %vm394_vm1 = vmor %vm392_vm15, %vm393_vm14 }
 0x77f   :  { %v389_v15 = vsub.f32 1.0, %v388_v14 }
 0x781   :  { %v390_v16 = vmul.f32 %v871_v13, %v389_v15 }
 0x783   :  { %v391_v17 = vadd.f32 %v871_v13, %v390_v16 }
 0x785   :  { %v395_v20 = vsel %vm394_vm1, %v871_v13, %v391_v17 }
 0x786   :  { %v400_v23 = vsel %vm397_vm2, %v399_v21, %v395_v20 }
 0x787   :  { %v403_v29 = vmul.f32 %v400_v23, %v356_v28 }
 0x7e4   :  { %v406_v22 = vpop.permute.xlu1 %405 }
 0x7e5   :  { %v408_v24 = vmul.f32 %v406_v22, %v400_v23 }
 0x7e7   :  { %410 = vrot.lane.b32.xlu2 %v408_v24, %s934_s4 }
 0x7ec   :  { %v423_v36 = vpop.permute.xlu1 %422 }
 0x7ef   :  { %429 = vperm.xlu2 %838, %v426_v25  }
 0x841   :  { %v411_v30 = vpop.permute.xlu2 %410 }
 0x842   :  { %v413_v31 = vadd.f32 %v411_v30, %v403_v29 }
 0x844   :  { %872 = vtanh.f32 %v413_v31  ;;  %v434_v3 = vmul.f32 %v423_v36, %v413_v31 }
 0x849   :  { %v430_v33 = vpop.permute.xlu2 %429 }
 0x84a   :  { %v873_v32 = vpop.eup %872  ;;  %v432_v37 = vmul.f32 %v430_v33, %v353_v0  ;;  %v435_v2 = vmul.f32 %v430_v33, %v356_v28 }
 0x84b   :  { %416 = vrot.lane.b32.xlu0 %v873_v32, %s933_s17 }
 0x84c   :  { %v436_v4 = vadd.f32 %v435_v2, %v434_v3 }
 0x8bd   :  { %v417_v34 = vpop.permute.xlu0 %416 }
 0x8be   :  { %v419_v35 = vmul.f32 %v417_v34, %v400_v23  ;;  %v116_v23 = vld [vmem:[%s1176_s1 + $0x28] sm:$0xff] }
 0x8c0   :  { %v425_v38 = vmul.f32 %v423_v36, %v419_v35 }
 0x8c2   :  { %v433_v39 = vadd.f32 %v432_v37, %v425_v38  ;;  %v586_v38 = vsub.f32 1.0, %v116_v23 }
 0x8c4   :  { %438 = vrot.lane.b32.xlu0 %v433_v39, %s934_s4 }
 0x936   :  { %v439_v41 = vpop.permute.xlu0 %438 }
 0x937   :  { %819 = vmatmul.msk.f32.vlgmr.msra.gmra.mxu2 %vm119_vm5, %v439_v41 }
 0x9ba   :  { %v459_v44 = vpop.f32.mrf.mxu2 }
 0x9bb   :  { %v462_v45 = vadd.f32 %v459_v44, %v96_v43 }
 0x9bd   :  { %874 = vtanh.f32 %v462_v45  ;;  %v820_v48 = vmul.f32 -1.442695, %v462_v45 }
 0x9bf   :  { %876 = vpow2.f32 %v820_v48 }
 0x9c3   :  { %v875_v46 = vpop.eup %874 }
 0x9c4   :  { %485 = vrot.lane.b32.xlu1 %v875_v46, %s933_s17 }
 0x9c5   :  { %v877_v51 = vpop.eup %876 }
 0x9c6   :  { %v466_v52 = vadd.f32 1.0, %v877_v51 }
 0x9c8   :  { %878 = vrcp.f32 %v466_v52  ;;  %v478_v58 = vand.u32 2147483648, %v466_v52  ;;  %vm472_vm3 = vweird.f32 %v466_v52  ;;  %v476_v59 = vand.u32 2147483647, %v466_v52 }
 0x9ca   :  { %v479_v61 = vor.u32 1.1754944e-38, %v478_v58  ;;  %vm477_vm6 = vcmp.eq.f32.partialorder %v476_v59, 8.507059e+37 }
 0x9cc   :  { %502 = vperm.xlu1 %837, %v115_v47  }
 0x9ce   :  { %v879_v53 = vpop.eup %878 }
 0x9cf   :  { %v468_v54 = vmul.f32 %v879_v53, %v466_v52  ;;  %vm473_vm0 = vweird.f32 %v879_v53 }
 0x9d0   :  { %vm474_vm4 = vmor %vm472_vm3, %vm473_vm0 }
 0x9d1   :  { %v469_v55 = vsub.f32 1.0, %v468_v54 }
 0x9d3   :  { %v470_v56 = vmul.f32 %v879_v53, %v469_v55 }
 0x9d5   :  { %v471_v57 = vadd.f32 %v879_v53, %v470_v56  ;;  %v102_v56 = vadd.f32 %v1040_v11, %v1074_v49 }
 0x9d7   :  { %v475_v60 = vsel %vm474_vm4, %v879_v53, %v471_v57 }
 0x9d8   :  { %v480_v63 = vsel %vm477_vm6, %v479_v61, %v475_v60  ;;  %v117_v60 = vld [vmem:[%s1176_s1 + $0x30] sm:$0xff] }
 0x9d9   :  { %v483_v5 = vmul.f32 %v480_v63, %v436_v4 }
 0xa36   :  { %v486_v62 = vpop.permute.xlu1 %485 }
 0xa37   :  { %v488_v0 = vmul.f32 %v486_v62, %v480_v63 }
 0xa39   :  { %490 = vrot.lane.b32.xlu2 %v488_v0, %s934_s4 }
 0xa3e   :  { %v503_v14 = vpop.permute.xlu1 %502 }
 0xa41   :  { %509 = vperm.xlu2 %838, %v506_v1  }
 0xa93   :  { %v491_v6 = vpop.permute.xlu2 %490 }
 0xa94   :  { %v493_v7 = vadd.f32 %v491_v6, %v483_v5 }
 0xa96   :  { %880 = vtanh.f32 %v493_v7  ;;  %v514_v40 = vmul.f32 %v503_v14, %v493_v7 }
 0xa9b   :  { %v510_v10 = vpop.permute.xlu2 %509 }
 0xa9c   :  { %v881_v8 = vpop.eup %880  ;;  %v512_v15 = vmul.f32 %v510_v10, %v433_v39  ;;  %v515_v39 = vmul.f32 %v510_v10, %v436_v4 }
 0xa9d   :  { %496 = vrot.lane.b32.xlu0 %v881_v8, %s933_s17 }
 0xa9e   :  { %v516_v41 = vadd.f32 %v515_v39, %v514_v40 }
 0xb0f   :  { %v497_v12 = vpop.permute.xlu0 %496 }
 0xb10   :  { %v499_v13 = vmul.f32 %v497_v12, %v480_v63 }
 0xb12   :  { %v505_v16 = vmul.f32 %v503_v14, %v499_v13  ;;  %v666_v13 = vsub.f32 1.0, %v117_v60 }
 0xb14   :  { %v513_v17 = vadd.f32 %v512_v15, %v505_v16 }
 0xb16   :  { %518 = vrot.lane.b32.xlu0 %v513_v17, %s934_s4 }
 0xb88   :  { %v519_v18 = vpop.permute.xlu0 %518 }
 0xb89   :  { %821 = vmatmul.msk.f32.vlgmr.msrb.gmra.mxu3 %vm119_vm5, %v519_v18 }
 0xc0c   :  { %v539_v20 = vpop.f32.mrf.mxu3 }
 0xc0d   :  { %v542_v21 = vadd.f32 %v539_v20, %v99_v19 }
 0xc0f   :  { %882 = vtanh.f32 %v542_v21  ;;  %v822_v24 = vmul.f32 -1.442695, %v542_v21 }
 0xc11   :  { %884 = vpow2.f32 %v822_v24 }
 0xc15   :  { %v883_v22 = vpop.eup %882 }
 0xc16   :  { %565 = vrot.lane.b32.xlu1 %v883_v22, %s933_s17 }
 0xc17   :  { %v885_v25 = vpop.eup %884 }
 0xc18   :  { %v546_v26 = vadd.f32 1.0, %v885_v25 }
 0xc1a   :  { %886 = vrcp.f32 %v546_v26  ;;  %v558_v31 = vand.u32 2147483648, %v546_v26  ;;  %vm552_vm8 = vweird.f32 %v546_v26  ;;  %v556_v32 = vand.u32 2147483647, %v546_v26 }
 0xc1c   :  { %v559_v34 = vor.u32 1.1754944e-38, %v558_v31  ;;  %vm557_vm10 = vcmp.eq.f32.partialorder %v556_v32, 8.507059e+37  ;;  %v118_v32 = vld [vmem:[%s1176_s1 + $0x38] sm:$0xff] }
 0xc1e   :  { %582 = vperm.xlu1 %837, %v116_v23  }
 0xc20   :  { %v887_v27 = vpop.eup %886 }
 0xc21   :  { %v548_v28 = vmul.f32 %v887_v27, %v546_v26  ;;  %vm553_vm7 = vweird.f32 %v887_v27 }
 0xc22   :  { %vm554_vm9 = vmor %vm552_vm8, %vm553_vm7 }
 0xc23   :  { %v549_v29 = vsub.f32 1.0, %v548_v28 }
 0xc25   :  { %v550_v9 = vmul.f32 %v887_v27, %v549_v29  ;;  %v105_v29 = vadd.f32 %v1040_v11, %v1076_v50 }
 0xc27   :  { %v551_v30 = vadd.f32 %v887_v27, %v550_v9 }
 0xc29   :  { %v555_v33 = vsel %vm554_vm9, %v887_v27, %v551_v30 }
 0xc2a   :  { %v560_v36 = vsel %vm557_vm10, %v559_v34, %v555_v33 }
 0xc2b   :  { %v563_v42 = vmul.f32 %v560_v36, %v516_v41 }
 0xc88   :  { %v566_v35 = vpop.permute.xlu1 %565 }
 0xc89   :  { %v568_v37 = vmul.f32 %v566_v35, %v560_v36 }
 0xc8b   :  { %570 = vrot.lane.b32.xlu2 %v568_v37, %s934_s4 }
 0xc90   :  { %v583_v51 = vpop.permute.xlu1 %582 }
 0xc93   :  { %589 = vperm.xlu2 %838, %v586_v38  }
 0xce5   :  { %v571_v43 = vpop.permute.xlu2 %570 }
 0xce6   :  { %v573_v44 = vadd.f32 %v571_v43, %v563_v42 }
 0xce8   :  { %888 = vtanh.f32 %v573_v44  ;;  %v594_v15 = vmul.f32 %v583_v51, %v573_v44 }
 0xced   :  { %v590_v46 = vpop.permute.xlu2 %589 }
 0xcee   :  { %v889_v45 = vpop.eup %888  ;;  %v592_v52 = vmul.f32 %v590_v46, %v513_v17  ;;  %v595_v14 = vmul.f32 %v590_v46, %v516_v41  ;;  %v746_v46 = vsub.f32 1.0, %v118_v32 }
 0xcef   :  { %576 = vrot.lane.b32.xlu0 %v889_v45, %s933_s17 }
 0xcf0   :  { %v596_v16 = vadd.f32 %v595_v14, %v594_v15 }
 0xd61   :  { %v577_v47 = vpop.permute.xlu0 %576 }
 0xd62   :  { %v579_v48 = vmul.f32 %v577_v47, %v560_v36 }
 0xd64   :  { %v585_v53 = vmul.f32 %v583_v51, %v579_v48 }
 0xd66   :  { %v593_v54 = vadd.f32 %v592_v52, %v585_v53 }
 0xd68   :  { %598 = vrot.lane.b32.xlu0 %v593_v54, %s934_s4 }
 0xdda   :  { %v599_v55 = vpop.permute.xlu0 %598 }
 0xddb   :  { %823 = vmatmul.msk.f32.vlgmr.msrb.gmra.mxu1 %vm119_vm5, %v599_v55 }
 0xe58   :  { %v619_v57 = vpop.f32.mrf.mxu1 }
 0xe59   :  { %v622_v58 = vadd.f32 %v619_v57, %v102_v56  ;;  %v757_v56 = vld [vmem:[%s1180_s5 + $0x18] sm:$0xff]  ;;  %v756_v57 = vld [vmem:[%s1180_s5 + $0x10] sm:$0xff] }
 0xe5a   :  { %779 = vmatpush.msra.mxu3 %v757_v56 }
 0xe5b   :  { %890 = vtanh.f32 %v622_v58  ;;  %v824_v61 = vmul.f32 -1.442695, %v622_v58  ;;  %v755_v58 = vld [vmem:[%s1180_s5 + $0x8] sm:$0xff] }
 0xe5c   :  { %780 = vmatpush.msra.mxu3 %v756_v57 }
 0xe5d   :  { %892 = vpow2.f32 %v824_v61 }
 0xe5e   :  { %781 = vmatpush.msra.mxu3 %v755_v58 }
 0xe61   :  { %v891_v59 = vpop.eup %890 }
 0xe62   :  { %645 = vrot.lane.b32.xlu1 %v891_v59, %s933_s17  ;;  %v754_v59 = vld [vmem:[%s1180_s5] sm:$0xff]  ;;  %s793_s5 = sshll.u32 %s936_s29, 4  ;;  %s794_s5 = int_to_ptr.vmem [resolvable:$true] %s793_s5 }
 0xe63   :  { %v893_v62 = vpop.eup %892  ;;  %782 = vmatpush.msra.mxu3 %v754_v59 }
 0xe64   :  { %v626_v63 = vadd.f32 1.0, %v893_v62 }
 0xe66   :  { %894 = vrcp.f32 %v626_v63  ;;  %v638_v4 = vand.u32 2147483648, %v626_v63  ;;  %vm632_vm12 = vweird.f32 %v626_v63  ;;  %v636_v5 = vand.u32 2147483647, %v626_v63 }
 0xe68   :  { %v639_v7 = vor.u32 1.1754944e-38, %v638_v4  ;;  %vm637_vm14 = vcmp.eq.f32.partialorder %v636_v5, 8.507059e+37 }
 0xe6a   :  { %662 = vperm.xlu1 %837, %v117_v60  }
 0xe6c   :  { %v895_v0 = vpop.eup %894 }
 0xe6d   :  { %v628_v1 = vmul.f32 %v895_v0, %v626_v63  ;;  %vm633_vm11 = vweird.f32 %v895_v0 }
 0xe6e   :  { %vm634_vm13 = vmor %vm632_vm12, %vm633_vm11 }
 0xe6f   :  { %v629_v2 = vsub.f32 1.0, %v628_v1 }
 0xe71   :  { %v630_v49 = vmul.f32 %v895_v0, %v629_v2 }
 0xe73   :  { %v631_v3 = vadd.f32 %v895_v0, %v630_v49 }
 0xe75   :  { %v635_v6 = vsel %vm634_vm13, %v895_v0, %v631_v3  ;;  %v841_v3 = vld [vmem:[%s1181_s6] ss:$0 sm:$0xff] }
 0xe76   :  { %v640_v10 = vsel %vm637_vm14, %v639_v7, %v635_v6 }
 0xe77   :  { %v643_v17 = vmul.f32 %v640_v10, %v596_v16 }
 0xed4   :  { %v646_v8 = vpop.permute.xlu1 %645 }
 0xed5   :  { %v648_v12 = vmul.f32 %v646_v8, %v640_v10 }
 0xed7   :  { %650 = vrot.lane.b32.xlu2 %v648_v12, %s934_s4 }
 0xedc   :  { %v663_v24 = vpop.permute.xlu1 %662 }
 0xedf   :  { %669 = vperm.xlu2 %838, %v666_v13  }
 0xf31   :  { %v651_v18 = vpop.permute.xlu2 %650 }
 0xf32   :  { %v653_v19 = vadd.f32 %v651_v18, %v643_v17 }
 0xf34   :  { %896 = vtanh.f32 %v653_v19  ;;  %v674_v48 = vmul.f32 %v663_v24, %v653_v19 }
 0xf39   :  { %v670_v21 = vpop.permute.xlu2 %669 }
 0xf3a   :  { %v897_v20 = vpop.eup %896  ;;  %v672_v25 = vmul.f32 %v670_v21, %v593_v54  ;;  %v675_v47 = vmul.f32 %v670_v21, %v596_v16 }
 0xf3b   :  { %656 = vrot.lane.b32.xlu0 %v897_v20, %s933_s17 }
 0xf3c   :  { %v676_v51 = vadd.f32 %v675_v47, %v674_v48 }
 0xfad   :  { %v657_v22 = vpop.permute.xlu0 %656 }
 0xfae   :  { %v659_v23 = vmul.f32 %v657_v22, %v640_v10 }
 0xfb0   :  { %v665_v26 = vmul.f32 %v663_v24, %v659_v23 }
 0xfb2   :  { %v673_v27 = vadd.f32 %v672_v25, %v665_v26 }
 0xfb4   :  { %678 = vrot.lane.b32.xlu0 %v673_v27, %s934_s4 }
0x1026   :  { %v679_v28 = vpop.permute.xlu0 %678 }
0x1027   :  { %825 = vmatmul.msk.f32.vlgmr.msrb.gmra.mxu2 %vm119_vm5, %v679_v28 }
0x10aa   :  { %v699_v9 = vpop.f32.mrf.mxu2 }
0x10ab   :  { %v702_v30 = vadd.f32 %v699_v9, %v105_v29 }
0x10ad   :  { %898 = vtanh.f32 %v702_v30  ;;  %v826_v33 = vmul.f32 -1.442695, %v702_v30 }
0x10af   :  { %900 = vpow2.f32 %v826_v33 }
0x10b3   :  { %v899_v31 = vpop.eup %898 }
0x10b4   :  { %725 = vrot.lane.b32.xlu1 %v899_v31, %s933_s17 }
0x10b5   :  { %v901_v34 = vpop.eup %900 }
0x10b6   :  { %v706_v35 = vadd.f32 1.0, %v901_v34 }
0x10b8   :  { %902 = vrcp.f32 %v706_v35  ;;  %v718_v39 = vand.u32 2147483648, %v706_v35  ;;  %vm712_vm1 = vweird.f32 %v706_v35  ;;  %v716_v40 = vand.u32 2147483647, %v706_v35 }
0x10ba   :  { %v719_v42 = vor.u32 1.1754944e-38, %v718_v39  ;;  %vm717_vm0 = vcmp.eq.f32.partialorder %v716_v40, 8.507059e+37 }
0x10bc   :  { %742 = vperm.xlu1 %837, %v118_v32  }
0x10be   :  { %v903_v36 = vpop.eup %902 }
0x10bf   :  { %v708_v37 = vmul.f32 %v903_v36, %v706_v35  ;;  %vm713_vm15 = vweird.f32 %v903_v36 }
0x10c0   :  { %vm714_vm2 = vmor %vm712_vm1, %vm713_vm15 }
0x10c1   :  { %v709_v38 = vsub.f32 1.0, %v708_v37 }
0x10c3   :  { %v710_v11 = vmul.f32 %v903_v36, %v709_v38 }
0x10c5   :  { %v711_v50 = vadd.f32 %v903_v36, %v710_v11 }
0x10c7   :  { %v715_v41 = vsel %vm714_vm2, %v903_v36, %v711_v50 }
0x10c8   :  { %v720_v44 = vsel %vm717_vm0, %v719_v42, %v715_v41 }
0x10c9   :  { %v723_v52 = vmul.f32 %v720_v44, %v676_v51 }
0x1126   :  { %v726_v43 = vpop.permute.xlu1 %725 }
0x1127   :  { %v728_v45 = vmul.f32 %v726_v43, %v720_v44 }
0x1129   :  { %730 = vrot.lane.b32.xlu2 %v728_v45, %s934_s4 }
0x112e   :  { %v743_v63 = vpop.permute.xlu1 %742 }
0x1131   :  { %749 = vperm.xlu2 %838, %v746_v46  }
0x1183   :  { %v731_v53 = vpop.permute.xlu2 %730 }
0x1184   :  { %v733_v54 = vadd.f32 %v731_v53, %v723_v52 }
0x1186   :  { %904 = vtanh.f32 %v733_v54 }
0x118b   :  { %v750_v60 = vpop.permute.xlu2 %749 }
0x118c   :  { %v905_v55 = vpop.eup %904  ;;  %v752_v0 = vmul.f32 %v750_v60, %v673_v27 }
0x118d   :  { %736 = vrot.lane.b32.xlu0 %v905_v55, %s933_s17 }
0x11ff   :  { %v737_v61 = vpop.permute.xlu0 %736 }
0x1200   :  { %v739_v62 = vmul.f32 %v737_v61, %v720_v44 }
0x1202   :  { %v745_v1 = vmul.f32 %v743_v63, %v739_v62 }
0x1204   :  { %v753_v2 = vadd.f32 %v752_v0, %v745_v1 }
0x1206   :  { %763 = vrot.lane.b32.xlu0 %v753_v2, %s934_s4 }
0x1278   :  { %v764_v49 = vpop.permute.xlu0 %763 }
0x1279   :  { %827 = vmatmul.msk.f32.vlgmr.msra.gmra.mxu3 %vm119_vm5, %v764_v49 }
0x12fc   :  { %v784_v4 = vpop.f32.mrf.mxu3 }
0x12fd   :  { %v785_v5 = vadd.f32 %v841_v3, %v784_v4 }
0x12ff   :  { %787 = vst [vmem:[#allocation2] sm:$0xff] %v785_v5 }
0x1300   :  { %798 = dma.vmem_to_hbm [thread:$0]  %s794_s5, 128, %s796_s9, [#allocation3]  }
0x1301   :  { %930 = dma.done.wait [#allocation3], 128  }
0x1302   :  { %931 = vsyncadd [#allocation3], 4294967168 }
0x1303   :  { %803 = vsyncpa [#allocation3], 1 }

</bundles_post_ra>
